<compile_context>
chip_gen: v5e
topology: v5e:2x2
jax: 0.10.0
libtpu: 0.0.40
codegen_flags: <defaults>
</compile_context>

<pallas_src>
import functools

import jax
import jax.numpy as jnp
from jax.experimental import pallas as pl
from jax.experimental.pallas import tpu as pltpu

# Hyper-parameters matching the PyTorch module defaults.
GAMMA_NEG = 4.0
GAMMA_POS = 1.0
CLIP = 0.05
EPS = 1e-08


def _int_pow(base, n):
    """base ** n for a static non-negative integer n via repeated squaring (VPU only)."""
    if n == 0:
        return jnp.ones_like(base)
    result = None
    b = base
    while True:
        if n & 1:
            result = b if result is None else result * b
        n >>= 1
        if n == 0:
            break
        b = b * b
    return result


def _asl_kernel(x_ref, y_ref, out_ref, *, gamma_neg, gamma_pos, clip, eps,
                use_int_gammas, tile_b, c_pad, b_valid, c_valid, need_mask):
    """One [tile_b, c_pad] block -> one (8, 128) partial-sum tile of the (un-negated) loss."""
    i = pl.program_id(0)

    x = x_ref[...].astype(jnp.float32)
    y = y_ref[...].astype(jnp.float32)

    targets = y
    anti_targets = 1.0 - y

    xs_pos = jax.nn.sigmoid(x)
    xs_neg = 1.0 - xs_pos
    if clip is not None and clip > 0:
        xs_neg = jnp.minimum(xs_neg + clip, 1.0)

    # Cross-entropy part.
    loss = targets * jnp.log(jnp.maximum(xs_pos, eps))
    loss = loss + anti_targets * jnp.log(jnp.maximum(xs_neg, eps))

    # Asymmetric focusing part.
    if gamma_neg > 0 or gamma_pos > 0:
        xp = xs_pos * targets
        xn = xs_neg * anti_targets
        base = 1.0 - xp - xn
        if use_int_gammas:
            # Binarized targets: exponent is gamma_pos where y==1, gamma_neg where y==0.
            # Repeated squaring on the 4-slot VALU avoids jnp.power's exp/log lowering
            # on the single-slot EUP (which already carries sigmoid + 2 logs).
            w = jnp.where(targets > 0.5,
                          _int_pow(base, int(gamma_pos)),
                          _int_pow(base, int(gamma_neg)))
        else:
            # Exact semantics of torch.pow for non-integer / soft-label cases.
            w = jnp.power(base, gamma_pos * targets + gamma_neg * anti_targets)
        loss = loss * w

    if need_mask:
        # Zero out wrapper-side padding (rows >= b_valid, cols >= c_valid).
        row_ids = jax.lax.broadcasted_iota(jnp.int32, (tile_b, c_pad), 0) + i * tile_b
        col_ids = jax.lax.broadcasted_iota(jnp.int32, (tile_b, c_pad), 1)
        valid = (row_ids < b_valid) & (col_ids < c_valid)
        loss = jnp.where(valid, loss, 0.0)

    # Fold (tile_b, c_pad) -> (8, 128) with vreg-wise VALU adds only
    # (no cross-lane XLU reduce, no scalar round-trip on the critical path).
    folded = jnp.sum(loss.reshape(tile_b // 8, 8, c_pad), axis=0)   # (8, c_pad)
    partial = folded[:, 0:128]
    for j in range(1, c_pad // 128):
        partial = partial + folded[:, j * 128:(j + 1) * 128]

    out_ref[0] = partial


def asymmetric_loss(x, y, *, gamma_neg=GAMMA_NEG, gamma_pos=GAMMA_POS,
                    clip=CLIP, eps=EPS, tile_b=None,
                    assume_binary_targets=True, cast_targets_bf16=True):
    """Pallas wrapper: scalar ASL loss, same semantics as AsymmetricLossOptimized.forward."""
    assert x.ndim == 2 and x.shape == y.shape
    B, C = x.shape

    # Pad the class dimension to a lane multiple (128).
    C_pad = ((C + 127) // 128) * 128

    # Generation-safe tile size: keep the double-buffered input blocks within ~8 MiB of
    # VMEM (fits every generation's scoped-VMEM limit; v7x has only 64 MiB physical).
    if tile_b is None:
        budget_bytes = 8 * 1024 * 1024
        per_row_bytes = 2 * 2 * C_pad * 4          # 2 inputs x 2 pipeline buffers x f32
        tile_b = max(8, min(1024, (budget_bytes // per_row_bytes) // 8 * 8))
    tile_b = min(tile_b, ((B + 7) // 8) * 8)        # small problems -> a single grid step
    B_pad = ((B + tile_b - 1) // tile_b) * tile_b

    need_mask = (B_pad != B) or (C_pad != C)
    if need_mask:
        x = jnp.pad(x, ((0, B_pad - B), (0, C_pad - C)))
        y = jnp.pad(y, ((0, B_pad - B), (0, C_pad - C)))
    if cast_targets_bf16:
        # 0/1 multi-label targets are exact in bf16; halves HBM traffic for y
        # on this memory-bound kernel.
        y = y.astype(jnp.bfloat16)

    use_int_gammas = (assume_binary_targets
                      and float(gamma_pos).is_integer()
                      and float(gamma_neg).is_integer()
                      and gamma_pos >= 0 and gamma_neg >= 0)

    num_tiles = B_pad // tile_b
    kernel = functools.partial(
        _asl_kernel, gamma_neg=gamma_neg, gamma_pos=gamma_pos, clip=clip, eps=eps,
        use_int_gammas=use_int_gammas, tile_b=tile_b, c_pad=C_pad,
        b_valid=B, c_valid=C, need_mask=need_mask)

    partials = pl.pallas_call(
        kernel,
        out_shape=jax.ShapeDtypeStruct((num_tiles, 8, 128), jnp.float32),
        grid_spec=pltpu.PrefetchScalarGridSpec(
            num_scalar_prefetch=0,
            grid=(num_tiles,),
            in_specs=[
                pl.BlockSpec((tile_b, C_pad), lambda i: (i, 0)),
                pl.BlockSpec((tile_b, C_pad), lambda i: (i, 0)),
            ],
            out_specs=pl.BlockSpec((1, 8, 128), lambda i: (i, 0, 0)),
        ),
        compiler_params=pltpu.CompilerParams(
            dimension_semantics=("parallel",),       # no loop-carried state -> megacore OK
            vmem_limit_bytes=32 * 1024 * 1024),
    )(x, y)

    # Final cross-tile / cross-lane reduction + negation happen once, outside the kernel.
    return -jnp.sum(partials, dtype=jnp.float32)


def _reference(x, y, *, gamma_neg=GAMMA_NEG, gamma_pos=GAMMA_POS,
               clip=CLIP, eps=EPS):
    """Pure-JAX reference mirroring the PyTorch module, for correctness check."""
    targets = y
    anti = 1.0 - y
    xs_pos = jax.nn.sigmoid(x)
    xs_neg = 1.0 - xs_pos
    if clip is not None and clip > 0:
        xs_neg = jnp.minimum(xs_neg + clip, 1.0)
    loss = targets * jnp.log(jnp.maximum(xs_pos, eps))
    loss = loss + anti * jnp.log(jnp.maximum(xs_neg, eps))
    if gamma_neg > 0 or gamma_pos > 0:
        xp = xs_pos * targets
        xn = xs_neg * anti
        w = jnp.power(1.0 - xp - xn, gamma_pos * targets + gamma_neg * anti)
        loss = loss * w
    return -jnp.sum(loss)


if __name__ == "__main__":
    key = jax.random.PRNGKey(0)
    kx, ky = jax.random.split(key)

    # Aligned case: batch=16 samples, 128 classes (multi-label).
    B, C = 16, 128
    x = jax.random.normal(kx, (B, C), dtype=jnp.float32) * 2.0
    y = jax.random.bernoulli(ky, p=0.1, shape=(B, C)).astype(jnp.float32)

    out = jax.block_until_ready(asymmetric_loss(x, y))
    ref = jax.block_until_ready(_reference(x, y))
    assert jnp.allclose(out, ref, rtol=1e-5, atol=1e-4), (out, ref)

    # Unaligned case: exercises wrapper padding + in-kernel masking.
    B2, C2 = 13, 200
    kx2, ky2 = jax.random.split(ky)
    x2 = jax.random.normal(kx2, (B2, C2), dtype=jnp.float32) * 2.0
    y2 = jax.random.bernoulli(ky2, p=0.1, shape=(B2, C2)).astype(jnp.float32)

    out2 = jax.block_until_ready(asymmetric_loss(x2, y2))
    ref2 = jax.block_until_ready(_reference(x2, y2))
    assert jnp.allclose(out2, ref2, rtol=1e-5, atol=1e-4), (out2, ref2)

    print("KERNEL_OK")
</pallas_src>

<mosaic_0001>
module attributes {stable_mosaic.version = 11 : i64} {
  func.func @_asl_kernel(%arg0: i32, %arg1: memref<16x128xf32, #tpu.memory_space<vmem>>, %arg2: memref<16x128xbf16, #tpu.memory_space<vmem>>, %arg3: memref<1x8x128xf32, #tpu.memory_space<vmem>>) attributes {dimension_semantics = [#tpu.dimension_semantics<parallel>], iteration_bounds = array<i64: 1>, scalar_prefetch = 0 : i64, scratch_operands = 0 : i64, tpu.core_type = #tpu.core_type<tc>, window_params = [{transform_indices = @transform_0, window_bounds = array<i64: 16, 128>}, {transform_indices = @transform_1, window_bounds = array<i64: 16, 128>}, {transform_indices = @transform_2, window_bounds = array<i64: 1, 8, 128>}]} {
    %c0 = arith.constant 0 : index
    %c0_0 = arith.constant 0 : index
    %0 = vector.load %arg1[%c0, %c0_0] : memref<16x128xf32, #tpu.memory_space<vmem>>, vector<16x128xf32>
    %c0_1 = arith.constant 0 : index
    %c0_2 = arith.constant 0 : index
    %1 = vector.load %arg2[%c0_1, %c0_2] : memref<16x128xbf16, #tpu.memory_space<vmem>>, vector<16x128xbf16>
    %2 = arith.extf %1 : vector<16x128xbf16> to vector<16x128xf32>
    %cst = arith.constant 1.000000e+00 : f32
    %3 = vector.broadcast %cst : f32 to vector<16x128xf32>
    %4 = arith.subf %3, %2 : vector<16x128xf32>
    %5 = arith.negf %0 : vector<16x128xf32>
    %6 = math.exp %5 : vector<16x128xf32>
    %cst_3 = arith.constant 1.000000e+00 : f32
    %7 = vector.broadcast %cst_3 : f32 to vector<16x128xf32>
    %8 = arith.addf %7, %6 : vector<16x128xf32>
    %9 = arith.divf %7, %8 : vector<16x128xf32>
    %cst_4 = arith.constant 1.000000e+00 : f32
    %10 = vector.broadcast %cst_4 : f32 to vector<16x128xf32>
    %11 = arith.subf %10, %9 : vector<16x128xf32>
    %cst_5 = arith.constant 5.000000e-02 : f32
    %12 = vector.broadcast %cst_5 : f32 to vector<16x128xf32>
    %13 = arith.addf %11, %12 : vector<16x128xf32>
    %cst_6 = arith.constant 1.000000e+00 : f32
    %14 = vector.broadcast %cst_6 : f32 to vector<16x128xf32>
    %15 = arith.minimumf %13, %14 : vector<16x128xf32>
    %cst_7 = arith.constant 9.99999993E-9 : f32
    %16 = vector.broadcast %cst_7 : f32 to vector<16x128xf32>
    %17 = arith.maximumf %9, %16 : vector<16x128xf32>
    %18 = math.log %17 : vector<16x128xf32>
    %19 = arith.mulf %2, %18 : vector<16x128xf32>
    %cst_8 = arith.constant 9.99999993E-9 : f32
    %20 = vector.broadcast %cst_8 : f32 to vector<16x128xf32>
    %21 = arith.maximumf %15, %20 : vector<16x128xf32>
    %22 = math.log %21 : vector<16x128xf32>
    %23 = arith.mulf %4, %22 : vector<16x128xf32>
    %24 = arith.addf %19, %23 : vector<16x128xf32>
    %25 = arith.mulf %9, %2 : vector<16x128xf32>
    %26 = arith.mulf %15, %4 : vector<16x128xf32>
    %cst_9 = arith.constant 1.000000e+00 : f32
    %27 = vector.broadcast %cst_9 : f32 to vector<16x128xf32>
    %28 = arith.subf %27, %25 : vector<16x128xf32>
    %29 = arith.subf %28, %26 : vector<16x128xf32>
    %cst_10 = arith.constant 5.000000e-01 : f32
    %30 = vector.broadcast %cst_10 : f32 to vector<16x128xf32>
    %31 = arith.cmpf ogt, %2, %30 : vector<16x128xf32>
    %32 = arith.mulf %29, %29 : vector<16x128xf32>
    %33 = arith.mulf %32, %32 : vector<16x128xf32>
    %34 = arith.select %31, %29, %33 : vector<16x128xi1>, vector<16x128xf32>
    %35 = arith.mulf %24, %34 : vector<16x128xf32>
    %36 = vector.shape_cast %35 : vector<16x128xf32> to vector<2x8x128xf32>
    %cst_11 = arith.constant dense<0.000000e+00> : vector<8x128xf32>
    %37 = vector.multi_reduction <add>, %36, %cst_11 [0] : vector<2x8x128xf32> to vector<8x128xf32>
    %c0_12 = arith.constant 0 : index
    %c0_13 = arith.constant 0 : index
    %c0_14 = arith.constant 0 : index
    %38 = vector.load %arg3[%c0_12, %c0_13, %c0_14] : memref<1x8x128xf32, #tpu.memory_space<vmem>>, vector<1x8x128xf32>
    %39 = vector.shape_cast %38 : vector<1x8x128xf32> to vector<8x128xf32>
    %40 = vector.shape_cast %37 : vector<8x128xf32> to vector<1x8x128xf32>
    tpu.vector_store %arg3[%c0_12, %c0_13, %c0_14], %40 {strides = array<i32>} : memref<1x8x128xf32, #tpu.memory_space<vmem>>, vector<1x8x128xf32>,
    return
  }
  func.func @transform_0(%arg0: i32) -> (i32, i32) {
    %c0_i32 = arith.constant 0 : i32
    %c0_i32_0 = arith.constant 0 : i32
    return %arg0, %c0_i32 : i32, i32
  }
  func.func @transform_1(%arg0: i32) -> (i32, i32) {
    %c0_i32 = arith.constant 0 : i32
    %c0_i32_0 = arith.constant 0 : i32
    return %arg0, %c0_i32 : i32, i32
  }
  func.func @transform_2(%arg0: i32) -> (i32, i32, i32) {
    %c0_i32 = arith.constant 0 : i32
    %c0_i32_0 = arith.constant 0 : i32
    %c0_i32_1 = arith.constant 0 : i32
    return %arg0, %c0_i32, %c0_i32_0 : i32, i32, i32
  }
}

</mosaic_0001>

<bundles_post_ra>
// kernel: tpu_custom_call.1
= control target key start
LH: loop header
LB: loop body
LE: loop exit
PB: predicated region body
PF: predicated region fallthrough
CT: control target
= control target key end

     0   :  { %7 = vsyncpa [#allocation3], 0  ;;  %s290_s0 = inlined_call_operand.hbm [shape: f32[16,128], index: 0, kind: input, shape index: {}]   ;;  %s291_s1 = inlined_call_operand.hbm [shape: bf16[16,128], index: 1, kind: input, shape index: {}]   ;;  %s292_s2 = inlined_call_operand.hbm [shape: f32[1,8,128], index: 2, kind: output, shape index: {}]  }
   0x1   :  { %8 = vsyncpa [#allocation6], 0 }
   0x2   :  { %9 = vsyncpa [#allocation4], 0  ;;  %s14_s11 = sshll.u32 %s290_s0, 4  ;;  %s259_s12 = smov [#allocation2]   ;;  %s15_s11 = int_to_ptr.hbm [resolvable:$true] %s14_s11 }
   0x3   :  { %s16_s13 = sshll.u32 %s259_s12, 4  ;;  %s27_s16 = sshll.u32 %s291_s1, 4  ;;  %s17_s13 = int_to_ptr.vmem [resolvable:$true] %s16_s13  ;;  %s28_s16 = int_to_ptr.hbm [resolvable:$true] %s27_s16 }
   0x4   :  { %s260_s17 = smov 128   ;;  %s261_s18 = smov 8  }
   0x5   :  { %22 = dma.hbm_to_vmem [thread:$0]  %s15_s11, 256, %s17_s13, [#allocation3], %s260_s17, %s260_s17, %s261_s18  }
   0x6   :  { %s262_s19 = smov [#allocation5]   ;;  %s263_s21 = smov 64  }
   0x7   :  { %s29_s20 = sshll.u32 %s262_s19, 4  ;;  %s264_s22 = smov 4   ;;  %s30_s20 = int_to_ptr.vmem [resolvable:$true] %s29_s20 }
   0x8   :  { %35 = dma.hbm_to_vmem [thread:$0]  %s28_s16, 128, %s30_s20, [#allocation6], %s263_s21, %s263_s21, %s264_s22  }
   0x9   :  { %253 = dma.done.wait [#allocation3], 256  }
   0xa   :  { %254 = vsyncadd [#allocation3], 4294967040 }
   0xb   :  { %255 = dma.done.wait [#allocation6], 128  }
   0xc   :  { %256 = vsyncadd [#allocation6], 4294967168  ;;  %v44_v0 = vld [vmem:[#allocation2] sm:$0xff]  ;;  %v45_v1 = vld [vmem:[#allocation2 + $0x8] sm:$0xff]  ;;  %s265_s0 = smov [#allocation7]   ;;  %s141_s25 = sshll.u32 %s292_s2, 4  ;;  %s142_s25 = int_to_ptr.hbm [resolvable:$true] %s141_s25 }
   0xd   :  { %v152_v2 = vmul.f32 -1.442695, %v44_v0  ;;  %v153_v3 = vmul.f32 -1.442695, %v45_v1  ;;  %v155_v16 = vld [vmem:[#allocation5] sm:$0xff]   ;;  %s139_s1 = sshll.u32 %s265_s0, 4  ;;  %s140_s1 = int_to_ptr.vmem [resolvable:$true] %s139_s1 }
   0xe   :  { %v156_v22 = vunpack.c.l.bf16 %v155_v16  ;;  %v157_v25 = vunpack.c.h.bf16 %v155_v16 }
   0xf   :  { %165 = vpow2.f32 %v152_v2 }
  0x10   :  { %167 = vpow2.f32 %v153_v3  ;;  %v50_v37 = vsub.f32 1.0, %v156_v22  ;;  %v51_v39 = vsub.f32 1.0, %v157_v25  ;;  %vm122_vm8 = vcmp.gt.f32.partialorder %v156_v22, 0.5 }
  0x11   :  { %vm123_vm9 = vcmp.gt.f32.partialorder %v157_v25, 0.5 }
  0x15   :  { %v166_v4 = vpop.eup %165 }
  0x16   :  { %v168_v5 = vpop.eup %167  ;;  %v58_v6 = vadd.f32 1.0, %v166_v4 }
  0x17   :  { %v59_v7 = vadd.f32 1.0, %v168_v5 }
  0x18   :  { %169 = vrcp.f32 %v58_v6  ;;  %vm65_vm0 = vweird.f32 %v58_v6  ;;  %v71_v11 = vand.u32 2147483648, %v58_v6  ;;  %v69_v14 = vand.u32 2147483647, %v58_v6 }
  0x19   :  { %171 = vrcp.f32 %v59_v7  ;;  %v86_v15 = vand.u32 2147483648, %v59_v7  ;;  %vm80_vm2 = vweird.f32 %v59_v7  ;;  %v84_v18 = vand.u32 2147483647, %v59_v7 }
  0x1a   :  { %v72_v20 = vor.u32 1.1754944e-38, %v71_v11  ;;  %vm70_vm5 = vcmp.eq.f32.partialorder %v69_v14, 8.507059e+37 }
  0x1b   :  { %v87_v24 = vor.u32 1.1754944e-38, %v86_v15  ;;  %vm85_vm7 = vcmp.eq.f32.partialorder %v84_v18, 8.507059e+37 }
  0x1e   :  { %v170_v8 = vpop.eup %169 }
  0x1f   :  { %v172_v9 = vpop.eup %171  ;;  %v61_v10 = vmul.f32 %v170_v8, %v58_v6  ;;  %vm66_vm1 = vweird.f32 %v170_v8 }
  0x20   :  { %v76_v12 = vmul.f32 %v172_v9, %v59_v7  ;;  %vm81_vm3 = vweird.f32 %v172_v9  ;;  %vm67_vm4 = vmor %vm65_vm0, %vm66_vm1 }
  0x21   :  { %v62_v13 = vsub.f32 1.0, %v61_v10  ;;  %vm82_vm6 = vmor %vm80_vm2, %vm81_vm3 }
  0x22   :  { %v77_v17 = vsub.f32 1.0, %v76_v12 }
  0x23   :  { %v63_v19 = vmul.f32 %v170_v8, %v62_v13 }
  0x24   :  { %v78_v21 = vmul.f32 %v172_v9, %v77_v17 }
  0x25   :  { %v64_v23 = vadd.f32 %v170_v8, %v63_v19 }
  0x26   :  { %v79_v26 = vadd.f32 %v172_v9, %v78_v21 }
  0x27   :  { %v68_v27 = vsel %vm67_vm4, %v170_v8, %v64_v23 }
  0x28   :  { %v73_v28 = vsel %vm70_vm5, %v72_v20, %v68_v27  ;;  %v83_v29 = vsel %vm82_vm6, %v172_v9, %v79_v26 }
  0x29   :  { %v88_v30 = vsel %vm85_vm7, %v87_v24, %v83_v29  ;;  %v90_v31 = vsub.f32 1.0, %v73_v28  ;;  %v96_v32 = vmax.f32 %v73_v28, 1e-08  ;;  %v114_v33 = vmul.f32 %v156_v22, %v73_v28 }
  0x2a   :  { %v91_v34 = vsub.f32 1.0, %v88_v30  ;;  %v97_v35 = vmax.f32 %v88_v30, 1e-08  ;;  %v115_v36 = vmul.f32 %v157_v25, %v88_v30 }
  0x2b   :  { %v92_v38 = vadd.f32 0.05, %v90_v31  ;;  %173 = vlog2.f32 %v96_v32  ;;  %v118_v42 = vsub.f32 1.0, %v114_v33 }
  0x2c   :  { %v93_v40 = vadd.f32 0.05, %v91_v34  ;;  %175 = vlog2.f32 %v97_v35  ;;  %v119_v44 = vsub.f32 1.0, %v115_v36 }
  0x2d   :  { %v94_v41 = vmin.f32 %v92_v38, 1.0 }
  0x2e   :  { %v95_v43 = vmin.f32 %v93_v40, 1.0 }
  0x2f   :  { %v104_v45 = vmax.f32 %v94_v41, 1e-08  ;;  %v116_v46 = vmul.f32 %v94_v41, %v50_v37 }
  0x30   :  { %v105_v47 = vmax.f32 %v95_v43, 1e-08  ;;  %v117_v48 = vmul.f32 %v95_v43, %v51_v39 }
  0x31   :  { %v174_v49 = vpop.eup %173  ;;  %177 = vlog2.f32 %v104_v45  ;;  %v120_v50 = vsub.f32 %v118_v42, %v116_v46 }
  0x32   :  { %v176_v51 = vpop.eup %175  ;;  %179 = vlog2.f32 %v105_v47  ;;  %v121_v52 = vsub.f32 %v119_v44, %v117_v48  ;;  %v99_v54 = vmul.f32 0.6931472, %v174_v49 }
  0x33   :  { %v124_v53 = vmul.f32 %v120_v50, %v120_v50  ;;  %v101_v56 = vmul.f32 0.6931472, %v176_v51 }
  0x34   :  { %v125_v55 = vmul.f32 %v121_v52, %v121_v52  ;;  %v102_v60 = vmul.f32 %v156_v22, %v99_v54 }
  0x35   :  { %v126_v58 = vmul.f32 %v124_v53, %v124_v53  ;;  %v103_v63 = vmul.f32 %v157_v25, %v101_v56 }
  0x36   :  { %v127_v62 = vmul.f32 %v125_v55, %v125_v55 }
  0x37   :  { %v178_v57 = vpop.eup %177  ;;  %v128_v3 = vsel %vm122_vm8, %v120_v50, %v126_v58 }
  0x38   :  { %v180_v59 = vpop.eup %179  ;;  %v107_v61 = vmul.f32 0.6931472, %v178_v57  ;;  %v129_v5 = vsel %vm123_vm9, %v121_v52, %v127_v62 }
  0x39   :  { %v109_v0 = vmul.f32 0.6931472, %v180_v59 }
  0x3a   :  { %v110_v1 = vmul.f32 %v107_v61, %v50_v37 }
  0x3b   :  { %v111_v2 = vmul.f32 %v109_v0, %v51_v39 }
  0x3c   :  { %v112_v4 = vadd.f32 %v110_v1, %v102_v60 }
  0x3d   :  { %v113_v6 = vadd.f32 %v111_v2, %v103_v63 }
  0x3e   :  { %v130_v7 = vmul.f32 %v128_v3, %v112_v4 }
  0x3f   :  { %v131_v8 = vmul.f32 %v129_v5, %v113_v6 }
  0x41   :  { %v132_v9 = vadd.f32 %v131_v8, %v130_v7 }
  0x43   :  { %133 = vst [vmem:[#allocation7] sm:$0xff] %v132_v9 }
  0x44   :  { %144 = dma.vmem_to_hbm [thread:$0]  %s140_s1, 128, %s142_s25, [#allocation4]  }
  0x45   :  { %257 = dma.done.wait [#allocation4], 128  }
  0x46   :  { %258 = vsyncadd [#allocation4], 4294967168 }
  0x47   :  { %149 = vsyncpa [#allocation3], 1 }
  0x48   :  { %150 = vsyncpa [#allocation6], 1 }
  0x49   :  { %151 = vsyncpa [#allocation4], 1 }

</bundles_post_ra>
